<compile_context>
chip_gen: v7x
topology: tpu7x:2x2x1
jax: 0.10.0
libtpu: 0.0.40
codegen_flags: <defaults>
</compile_context>

<pallas_src>
import functools

import jax
import jax.numpy as jnp
from jax import lax
from jax.experimental import pallas as pl
from jax.experimental.pallas import tpu as pltpu


# ---------------------------------------------------------------------------
# Small-problem fast path: one call, whole problem in VMEM, mean in-kernel.
# ---------------------------------------------------------------------------
def _mse_small_kernel(fs_ref, gt_ref, out_ref, *, inv_count):
    fs = fs_ref[...].astype(jnp.float32)                   # (B, T)
    gt = gt_ref[...].astype(jnp.float32)                   # (B, T)

    gmin = jnp.min(gt, axis=1, keepdims=True)              # (B, 1)
    gmax = jnp.max(gt, axis=1, keepdims=True) - gmin       # (B, 1)
    inv = pl.reciprocal(gmax, approx=False)                # (B, 1)

    diff = fs - (gt - gmin) * inv
    sq = diff * diff
    total = jnp.sum(jnp.sum(sq, axis=1, keepdims=True), axis=0, keepdims=True)
    out_ref[...] = total * inv_count                       # (1, 1)


# ---------------------------------------------------------------------------
# Streaming path: per-block partial sum of squared errors.
# ---------------------------------------------------------------------------
def _mse_partial_kernel(fs_ref, gt_ref, part_ref, *, total_rows, block_rows,
                        needs_mask):
    """fs_ref, gt_ref: (TB, T) VMEM blocks (native dtype, upcast here).
    part_ref: (8, 128) f32 block; partial sum at [0, 0], zeros elsewhere so a
    plain jnp.sum over all partial blocks recovers the global sum."""
    fs = fs_ref[...].astype(jnp.float32)                   # (TB, T)
    gt = gt_ref[...].astype(jnp.float32)                   # (TB, T)

    # Per-row min-max normalization folded into the diff. gmax is computed
    # from raw gt (max(gt) - gmin == max(gt - gmin) exactly) so both lane
    # reductions read the same tile and no shifted temporary is materialized.
    gmin = jnp.min(gt, axis=1, keepdims=True)               # (TB, 1)
    gmax = jnp.max(gt, axis=1, keepdims=True) - gmin        # (TB, 1)
    inv = pl.reciprocal(gmax, approx=False)                  # (TB, 1)

    diff = fs - (gt - gmin) * inv
    sq = diff * diff

    if needs_mask:
        # Ragged last block: padded rows may hold garbage/NaN; the select
        # confines them (NaN cannot leak through jnp.where).
        row = (pl.program_id(0) * block_rows
               + lax.broadcasted_iota(jnp.int32, sq.shape, 0))
        sq = jnp.where(row < total_rows, sq, 0.0)

    part = jnp.sum(sq)

    r = lax.broadcasted_iota(jnp.int32, part_ref.shape, 0)
    c = lax.broadcasted_iota(jnp.int32, part_ref.shape, 1)
    part_ref[...] = jnp.where((r == 0) & (c == 0), part, 0.0)


def _choose_block_rows(B, T, itemsize):
    """Pick the batch tile for the streaming path.

    * ~4 MiB per input tile (2 inputs x 2 pipeline buffers + f32 temporaries
      stays well under the 48 MiB vmem_limit_bytes set by the caller).
    * sublane alignment matched to dtype packing (8 f32 / 16 bf16 / 32 int8).
    * keep grid >= 2 whenever B can be split, so the "parallel" axis actually
      uses both v7x TensorCores.
    * prefer a tb that divides B (no ragged tail -> no per-block masking).
    """
    align = max(8, 32 // max(itemsize, 1))
    target = max(align, (4 << 20) // max(T * itemsize, 1))
    if B >= 2 * align:
        target = min(target, pl.cdiv(B, 2))
    if target >= B:
        return B
    t_aligned = max(align, (target // align) * align)
    lower = max(align, (t_aligned // 2 // align) * align)
    for tb in range(t_aligned, lower - 1, -align):
        if B % tb == 0:
            return tb
    return t_aligned


_SMALL_BYTES = 2 << 20  # <= 2 MiB of f32 per input -> single-call fast path


def mse_loss(frame_score, gtscore, *, block_rows=None):
    """frame_score: (B, T, 1), gtscore: (B, T) -> scalar f32 MSE loss."""
    B, T, _ = frame_score.shape
    fs2d = frame_score.reshape(B, T)   # squeeze trailing singleton (free)
    gt2d = gtscore
    count = B * T

    # ---------------- small-problem fast path ----------------
    if block_rows is None and count * 4 <= _SMALL_BYTES:
        kernel = functools.partial(_mse_small_kernel, inv_count=1.0 / count)
        out = pl.pallas_call(
            kernel,
            out_shape=jax.ShapeDtypeStruct((1, 1), jnp.float32),
            in_specs=[pl.BlockSpec(memory_space=pltpu.MemorySpace.VMEM),
                      pl.BlockSpec(memory_space=pltpu.MemorySpace.VMEM)],
            out_specs=pl.BlockSpec(memory_space=pltpu.MemorySpace.VMEM),
        )(fs2d, gt2d)
        return out[0, 0]

    # ---------------- streaming path ----------------
    itemsize = max(jnp.dtype(fs2d.dtype).itemsize, jnp.dtype(gt2d.dtype).itemsize)
    tb = block_rows if block_rows is not None else _choose_block_rows(B, T, itemsize)
    tb = min(tb, B)
    grid = pl.cdiv(B, tb)
    needs_mask = (B % tb) != 0

    kernel = functools.partial(
        _mse_partial_kernel,
        total_rows=B, block_rows=tb, needs_mask=needs_mask)

    cost = pl.CostEstimate(
        flops=6 * count,
        transcendentals=0,
        bytes_accessed=(fs2d.size * jnp.dtype(fs2d.dtype).itemsize
                        + gt2d.size * jnp.dtype(gt2d.dtype).itemsize
                        + grid * 8 * 128 * 4),
    )

    partials = pl.pallas_call(
        kernel,
        out_shape=jax.ShapeDtypeStruct((grid * 8, 128), jnp.float32),
        grid=(grid,),
        in_specs=[
            pl.BlockSpec((tb, T), lambda i: (i, 0)),
            pl.BlockSpec((tb, T), lambda i: (i, 0)),
        ],
        out_specs=pl.BlockSpec((8, 128), lambda i: (i, 0)),
        compiler_params=pltpu.CompilerParams(
            dimension_semantics=("parallel",),
            vmem_limit_bytes=48 << 20),
        cost_estimate=cost,
    )(fs2d, gt2d)

    return jnp.sum(partials) / jnp.float32(count)


def _reference(frame_score, gtscore):
    gt = gtscore[..., None]
    gt = gt - jnp.min(gt, axis=1, keepdims=True)
    gt = gt / jnp.max(gt, axis=1, keepdims=True)
    return jnp.mean((frame_score - gt) ** 2)


if __name__ == "__main__":
    key = jax.random.PRNGKey(0)
    k1, k2, k3, k4, k5, k6 = jax.random.split(key, 6)

    # --- module-sized test (B=2, T=16): single-call fast path -------------
    B, T = 2, 16
    frame_score = jax.random.uniform(k1, (B, T, 1), dtype=jnp.float32)
    gtscore = jax.random.uniform(k2, (B, T), dtype=jnp.float32)

    loss = mse_loss(frame_score, gtscore)
    jax.block_until_ready(loss)
    ref = _reference(frame_score, gtscore)
    assert jnp.allclose(loss, ref, rtol=1e-5, atol=1e-6), (loss, ref)

    # --- streaming path, ragged tail (forced small tile) ------------------
    B2, T2 = 20, 128
    fs2 = jax.random.uniform(k3, (B2, T2, 1), dtype=jnp.float32)
    gt2 = jax.random.uniform(k4, (B2, T2), dtype=jnp.float32)

    loss2 = mse_loss(fs2, gt2, block_rows=8)   # grid=3, last block masked
    jax.block_until_ready(loss2)
    ref2 = _reference(fs2, gt2)
    assert jnp.allclose(loss2, ref2, rtol=1e-5, atol=1e-6), (loss2, ref2)

    # --- streaming path, divisible B (no masking), bf16 wire format -------
    B3, T3 = 64, 512
    fs3 = jax.random.uniform(k5, (B3, T3, 1), dtype=jnp.float32).astype(jnp.bfloat16)
    gt3 = jax.random.uniform(k6, (B3, T3), dtype=jnp.float32).astype(jnp.bfloat16)

    loss3 = mse_loss(fs3, gt3, block_rows=16)  # grid=4, bf16-aligned tile
    jax.block_until_ready(loss3)
    ref3 = _reference(fs3.astype(jnp.float32), gt3.astype(jnp.float32))
    assert jnp.allclose(loss3, ref3, rtol=1e-4, atol=1e-5), (loss3, ref3)

    print("KERNEL_OK")
</pallas_src>

<mosaic_0001>
module attributes {stable_mosaic.version = 11 : i64} {
  func.func @_mse_small_kernel(%arg0: memref<2x16xf32, #tpu.memory_space<vmem>>, %arg1: memref<2x16xf32, #tpu.memory_space<vmem>>, %arg2: memref<1x1xf32, #tpu.memory_space<vmem>>) attributes {dimension_semantics = [], scalar_prefetch = 0 : i64, scratch_operands = 0 : i64, tpu.core_type = #tpu.core_type<tc>} {
    %c0 = arith.constant 0 : index
    %c0_0 = arith.constant 0 : index
    %0 = vector.load %arg0[%c0, %c0_0] : memref<2x16xf32, #tpu.memory_space<vmem>>, vector<2x16xf32>
    %c0_1 = arith.constant 0 : index
    %c0_2 = arith.constant 0 : index
    %1 = vector.load %arg1[%c0_1, %c0_2] : memref<2x16xf32, #tpu.memory_space<vmem>>, vector<2x16xf32>
    %cst = arith.constant dense<0x7F800000> : vector<2xf32>
    %2 = vector.multi_reduction <minimumf>, %1, %cst [1] : vector<2x16xf32> to vector<2xf32>
    %3 = vector.shape_cast %2 : vector<2xf32> to vector<2x1xf32>
    %cst_3 = arith.constant dense<0xFF800000> : vector<2xf32>
    %4 = vector.multi_reduction <maximumf>, %1, %cst_3 [1] : vector<2x16xf32> to vector<2xf32>
    %5 = vector.shape_cast %4 : vector<2xf32> to vector<2x1xf32>
    %6 = arith.subf %5, %3 : vector<2x1xf32>
    %7 = tpu.reciprocal %6 : vector<2x1xf32> -> vector<2x1xf32>
    %8 = vector.broadcast %3 : vector<2x1xf32> to vector<2x16xf32>
    %9 = arith.subf %1, %8 : vector<2x16xf32>
    %10 = vector.broadcast %7 : vector<2x1xf32> to vector<2x16xf32>
    %11 = arith.mulf %9, %10 : vector<2x16xf32>
    %12 = arith.subf %0, %11 : vector<2x16xf32>
    %13 = arith.mulf %12, %12 : vector<2x16xf32>
    %cst_4 = arith.constant dense<0.000000e+00> : vector<2xf32>
    %14 = vector.multi_reduction <add>, %13, %cst_4 [1] : vector<2x16xf32> to vector<2xf32>
    %15 = vector.shape_cast %14 : vector<2xf32> to vector<2x1xf32>
    %cst_5 = arith.constant dense<0.000000e+00> : vector<1xf32>
    %16 = vector.multi_reduction <add>, %15, %cst_5 [0] : vector<2x1xf32> to vector<1xf32>
    %17 = vector.shape_cast %16 : vector<1xf32> to vector<1x1xf32>
    %cst_6 = arith.constant 3.125000e-02 : f32
    %18 = vector.broadcast %cst_6 : f32 to vector<1x1xf32>
    %19 = arith.mulf %17, %18 : vector<1x1xf32>
    %c0_7 = arith.constant 0 : index
    %c0_8 = arith.constant 0 : index
    %20 = vector.load %arg2[%c0_7, %c0_8] : memref<1x1xf32, #tpu.memory_space<vmem>>, vector<1x1xf32>
    tpu.vector_store %arg2[%c0_7, %c0_8], %19 {strides = array<i32>} : memref<1x1xf32, #tpu.memory_space<vmem>>, vector<1x1xf32>,
    return
  }
}

</mosaic_0001>

<bundles_post_ra>
// kernel: tpu_custom_call.1
= control target key start
LH: loop header
LB: loop body
LE: loop exit
PB: predicated region body
PF: predicated region fallthrough
CT: control target
= control target key end

     0   :  { %7 = vsyncpa [#allocation3], 0  ;;  %s167_s0 = inlined_call_operand.hbm [shape: f32[2,16], index: 0, kind: input, shape index: {}]   ;;  %s168_s1 = inlined_call_operand.vmem [shape: f32[2,16], index: 1, kind: input, shape index: {}]   ;;  %s169_s2 = inlined_call_operand.hbm [shape: f32[1,1], index: 2, kind: output, shape index: {}]  }
   0x1   :  { %8 = vsyncpa [#allocation4], 0  ;;  %s120_s9 = smov [#allocation2]   ;;  %s72_s13 = scalar_lea.hbm %s167_s0, 32 }
   0x2   :  { %s15_s10 = sshll.u32 %s120_s9, 4  ;;  %p73_p0 = scmp.ne.s32.totalorder %s167_s0, %s72_s13  ;;  %s16_s10 = int_to_ptr.vmem [resolvable:$true] %s15_s10 }
   0x3   :  { %p76_p1 = scmp.lt.u32.totalorder %s72_s13, %s167_s0 }
   0x5   :  { %p78_p2 = pnand %p76_p1, %p73_p0 }
   0x7   :  { %81 = shalt.err (!%p78_p2)
}
   0x8   :  { %s82_s18 = scalar_lea.vmem %s16_s10, 32  ;;  %p87_p4 = scmp.lt.s32.totalorder %s16_s10, %s16_s10 }
   0x9   :  { %p83_p3 = scmp.ne.s32.totalorder %s16_s10, %s82_s18  ;;  %p88_p5 = scmp.lt.s32.totalorder %s82_s18, %s82_s18 }
   0xb   :  { %p89_p6 = por %p88_p5, %p87_p4 }
   0xd   :  { %p90_p7 = pnand %p89_p6, %p83_p3 }
   0xf   :  { %93 = shalt.err (!%p90_p7)
}
  0x10   :  { %18 = dma.hbm_to_vmem [thread:$0]  %s167_s0, 32, %s16_s10, [#allocation3]  }
  0x11   :  { %116 = dma.done.wait [#allocation3], 32  }
  0x12   :  { %117 = vsyncadd [#allocation3], 4294967264  ;;  %vm26_vm0 = vcmask 123904   ;;  %v25_v0 = vld [vmem:[%s168_s1] sm:$0x3]  ;;  %vm42_vm1 = vcmask 1041408  }
  0x13   :  { %v27_v1 = vsel %vm26_vm0, %v25_v0, inf  ;;  %v30_v2 = vsel %vm26_vm0, %v25_v0, -inf  ;;  %v24_v8 = vld [vmem:[#allocation2] sm:$0x3]  ;;  %s121_s0 = smov [#allocation5]   ;;  %vm51_vm2 = vcmask 0  }
  0x14   :  { %28 = vmin.xlane.f32.xlu0 %v27_v1  ;;  %s59_s1 = sshll.u32 %s121_s0, 4  ;;  %s60_s1 = int_to_ptr.vmem [resolvable:$true] %s59_s1 }
  0x15   :  { %s94_s23 = scalar_lea.vmem %s60_s1, 16  ;;  %s98_s24 = scalar_lea.vmem %s60_s1, 32 }
  0x16   :  { %p95_p8 = scmp.ne.s32.totalorder %s60_s1, %s94_s23  ;;  %p99_p9 = scmp.lt.s32.totalorder %s60_s1, %s60_s1 }
  0x17   :  { %p100_p10 = scmp.lt.s32.totalorder %s98_s24, %s94_s23 }
  0x18   :  { %31 = vmax.xlane.f32.xlu0 %v30_v2 }
  0x19   :  { %p101_p11 = por %p100_p10, %p99_p9 }
  0x1b   :  { %p102_p12 = pnand %p101_p11, %p95_p8 }
  0xa1   :  { %v29_v3 = vpop.xlane.xlu0 %28 }
  0xa2   :  { %v35_v6 = vsub.f32 %v25_v0, %v29_v3 }
  0xa5   :  { %v32_v4 = vpop.xlane.xlu0 %31 }
  0xa6   :  { %v33_v5 = vsub.f32 %v32_v4, %v29_v3 }
  0xa8   :  { %70 = vrcp.f32 %v33_v5 }
  0xb2   :  { %v71_v7 = vpop.eup %70 }
  0xb3   :  { %v36_v9 = vmul.f32 %v71_v7, %v35_v6 }
  0xb5   :  { %v37_v10 = vsub.f32 %v24_v8, %v36_v9 }
  0xb7   :  { %v38_v11 = vmul.f32 %v37_v10, %v37_v10 }
  0xb9   :  { %v39_v12 = vsel %vm26_vm0, %v38_v11, 0.0 }
  0xba   :  { %40 = vadd.xlane.f32.xlu1 %v39_v12 }
 0x147   :  { %v41_v13 = vpop.xlane.xlu1 %40 }
 0x148   :  { %v43_v14 = vsel %vm42_vm1, %v41_v13, 0.0 }
 0x149   :  { %v44_v15 = vrot.slane %v43_v14, 4 }
 0x14b   :  { %v45_v16 = vadd.f32 %v44_v15, %v43_v14 }
 0x14d   :  { %v46_v17 = vrot.slane %v45_v16, 2 }
 0x14f   :  { %v47_v18 = vadd.f32 %v46_v17, %v45_v16 }
 0x151   :  { %v48_v19 = vrot.slane %v47_v18, 1 }
 0x153   :  { %v49_v20 = vadd.f32 %v48_v19, %v47_v18 }
 0x155   :  { %v50_v21 = vmul.f32 0.03125, %v49_v20 }
 0x157   :  { %52 = vst.msk [vmem:[#allocation5] sm:$0x1] %vm51_vm2, %v50_v21 }
 0x158   :  { %105 = shalt.err (!%p102_p12)
}
 0x159   :  { %s106_s27 = scalar_lea.hbm %s169_s2, 16 }
 0x15a   :  { %p107_p13 = scmp.ne.s32.totalorder %s169_s2, %s106_s27  ;;  %p110_p0 = scmp.lt.u32.totalorder %s106_s27, %s169_s2 }
 0x15c   :  { %p112_p1 = pnand %p110_p0, %p107_p13 }
 0x15e   :  { %115 = shalt.err (!%p112_p1)
}
 0x15f   :  { %62 = dma.vmem_to_hbm [thread:$0]  %s60_s1, 16, %s169_s2, [#allocation4]  }
 0x160   :  { %118 = dma.done.wait [#allocation4], 16  }
 0x161   :  { %119 = vsyncadd [#allocation4], 4294967280 }
 0x162   :  { %66 = vsyncpa [#allocation3], 1 }
 0x163   :  { %67 = vsyncpa [#allocation4], 1 }

</bundles_post_ra>
